<compile_context>
chip_gen: v7x
topology: tpu7x:2x2x1
jax: 0.10.0
libtpu: 0.0.40
codegen_flags: <defaults>
</compile_context>

<pallas_src>
import functools

import numpy as np

import jax
import jax.numpy as jnp
from jax.experimental import pallas as pl
from jax.experimental.pallas import tpu as pltpu


def _round_up(x, m):
    return ((x + m - 1) // m) * m


# ----------------------------- Pallas kernel ------------------------------- #
def _resize_kernel(wh_ref, wwt_ref, x_ref, o_ref, *, bt):
    """wh_ref: (TOH, H), wwt_ref: (W, OWp), x_ref: (Bt, H, W), o_ref: (Bt, TOH, OWp)."""
    wh = wh_ref[...]
    wwt = wwt_ref[...]
    for b in range(bt):  # static unroll, bt <= 8; each slice is an independent 2-D MXU matmul
        t = jnp.dot(wh, x_ref[b], preferred_element_type=jnp.float32)      # (TOH, W) f32
        o_ref[b] = jnp.dot(t.astype(wwt.dtype), wwt,
                           preferred_element_type=jnp.float32).astype(o_ref.dtype)


def _choose_tiles(B, H, W, OH, OW, in_itemsize, out_itemsize,
                  vmem_budget=14 * 1024 * 1024):
    """Pick (Bt, TOH, OHp, OWp) so the per-step working set fits scoped VMEM."""
    OWp = _round_up(OW, 128)                       # lane-dense stores, aligned MXU N dim
    divisors = [d for d in range(1, min(B, 8) + 1) if B % d == 0]
    two_plus = [d for d in divisors if B // d >= 2]  # keep >=2 parallel blocks (v7x: 2 TCs)
    Bt = max(two_plus) if two_plus else max(divisors)
    TOH = _round_up(OH, 8)

    def step_bytes(bt, toh):
        return (2 * bt * H * W * in_itemsize          # x block (double buffered)
                + 2 * bt * toh * OWp * out_itemsize   # out block (double buffered)
                + 2 * toh * H * in_itemsize           # Wh tile
                + 2 * W * OWp * in_itemsize           # Wwt
                + toh * W * 4)                        # f32 intermediate

    while step_bytes(Bt, TOH) > vmem_budget and (TOH > 256 or Bt > 1):
        if TOH > 256:
            TOH = _round_up((TOH + 1) // 2, 8)        # OH tiling bounds v7x/v5e VMEM
        else:
            Bt = max(d for d in divisors if d < Bt)
    OHp = _round_up(OH, TOH)
    return Bt, TOH, OHp, OWp


def _pad_to(a, shape):
    pads = [(0, s - d) for d, s in zip(a.shape, shape)]
    if all(p == (0, 0) for p in pads):
        return a
    return jnp.pad(a, pads)


def resize_batched(x_b, wh, wwt):
    """x_b: (B, H, W); wh: (OH, H); wwt: (W, OW) in compute dtype -> (B, OH, OW) in x_b.dtype."""
    B, H, W = x_b.shape
    OH, OW = wh.shape[0], wwt.shape[1]
    cdt = wh.dtype
    Bt, TOH, OHp, OWp = _choose_tiles(
        B, H, W, OH, OW, np.dtype(cdt).itemsize, np.dtype(x_b.dtype).itemsize)
    nb, noh = B // Bt, OHp // TOH

    wh_p = _pad_to(wh, (OHp, H))      # zero rows beyond OH -> sliced off below
    wwt_p = _pad_to(wwt, (W, OWp))    # zero cols beyond OW -> sliced off below
    x_c = x_b.astype(cdt)
    kernel = functools.partial(_resize_kernel, bt=Bt)

    def run(single_buffer_weights):
        # Constant-index weight blocks don't need a second pipeline buffer.
        buf = dict(pipeline_mode=pl.Buffered(1)) if single_buffer_weights else {}
        wh_kwargs = buf if noh == 1 else {}     # wh's block index varies with the OH tile
        return pl.pallas_call(
            kernel,
            out_shape=jax.ShapeDtypeStruct((B, OHp, OWp), x_b.dtype),
            grid=(nb, noh),
            in_specs=[
                pl.BlockSpec((TOH, H), lambda bi, oi: (oi, 0), **wh_kwargs),   # Wh tile
                pl.BlockSpec((W, OWp), lambda bi, oi: (0, 0), **buf),          # Ww^T (resident)
                pl.BlockSpec((Bt, H, W), lambda bi, oi: (bi, 0, 0)),           # image slices
            ],
            out_specs=pl.BlockSpec((Bt, TOH, OWp), lambda bi, oi: (bi, oi, 0)),
            compiler_params=pltpu.CompilerParams(
                dimension_semantics=("parallel", "parallel")),
        )(wh_p, wwt_p, x_c)

    try:
        y = run(True)
    except Exception:   # pipeline_mode unsupported on this jax build -> default buffering
        y = run(False)
    return y[:, :OH, :OW]


# ------------------------------ JAX glue ----------------------------------- #
def _aa_resize_matrix(in_size, out_size):
    """(out_size, in_size) antialiased bilinear resize weights (f32).

    Vectorized mirror of PyTorch's _compute_weights_aa (bilinear filter,
    align_corners=False, border clipping + renormalization).
    """
    scale = in_size / out_size
    support = scale if scale >= 1.0 else 1.0
    invscale = (1.0 / scale) if scale >= 1.0 else 1.0

    i = jnp.arange(out_size, dtype=jnp.float32)
    center = scale * (i + 0.5)
    # int() truncation toward zero, as in the C++ static_cast (values clamped >= 0 after).
    xmin = jnp.maximum((center - support + 0.5).astype(jnp.int32), 0)
    xmax = jnp.minimum((center + support + 0.5).astype(jnp.int32), in_size)

    q = jnp.arange(in_size, dtype=jnp.float32)
    w = jnp.maximum(0.0, 1.0 - jnp.abs((q[None, :] - center[:, None] + 0.5) * invscale))
    qi = jnp.arange(in_size, dtype=jnp.int32)
    inside = (qi[None, :] >= xmin[:, None]) & (qi[None, :] < xmax[:, None])
    w = w * inside.astype(jnp.float32)
    denom = jnp.sum(w, axis=1, keepdims=True)
    return w / jnp.where(denom > 0.0, denom, 1.0)


def get_random_size(rng, h, w, min_size, max_size):
    """Mirror of Resize.get_random_size; host-side numpy RNG (no device sync)."""
    oh = int(rng.integers(int(min_size * h), int(max_size * h) + 1))
    ow = int(rng.integers(int(min_size * w), int(max_size * w) + 1))
    return oh, ow


def resize_forward(image, mask=None, output_size=None, compute_dtype=jnp.bfloat16):
    """image: (N, C, H, W) f32; mask: (N, 1, H, W) f32 or None (NCHW like PyTorch)."""
    N, C, H, W = image.shape
    OH, OW = output_size

    wh = _aa_resize_matrix(H, OH).astype(compute_dtype)      # (OH, H)
    wwt = _aa_resize_matrix(W, OW).T.astype(compute_dtype)   # (W, OW)

    out_img = resize_batched(image.reshape(N * C, H, W), wh, wwt).reshape(N, C, OH, OW)
    out_mask = None
    if mask is not None:
        Cm = mask.shape[1]
        out_mask = resize_batched(mask.reshape(N * Cm, H, W), wh, wwt).reshape(N, Cm, OH, OW)
    return out_img, out_mask


# ----------------------- numpy reference (check) --------------------------- #
def _aa_weights_ref(in_size, out_size):
    """Literal per-row translation of PyTorch's antialiased bilinear weights."""
    scale = in_size / out_size
    support = scale if scale >= 1.0 else 1.0
    invscale = (1.0 / scale) if scale >= 1.0 else 1.0
    mat = np.zeros((out_size, in_size), np.float64)
    for i in range(out_size):
        center = scale * (i + 0.5)
        xmin = max(int(center - support + 0.5), 0)
        xmax = min(int(center + support + 0.5), in_size)
        total = 0.0
        for q in range(xmin, xmax):
            w = max(0.0, 1.0 - abs((q - center + 0.5) * invscale))
            mat[i, q] = w
            total += w
        if total != 0.0:
            mat[i, xmin:xmax] /= total
    return mat


def ref_resize(img, OH, OW):
    img = np.asarray(img, np.float64)
    wh = _aa_weights_ref(img.shape[2], OH)
    ww = _aa_weights_ref(img.shape[3], OW)
    return np.einsum('oh,pw,nchw->ncop', wh, ww, img).astype(np.float32)


# --------------------------------- main ------------------------------------ #
if __name__ == "__main__":
    key = jax.random.PRNGKey(0)
    k_img, k_mask = jax.random.split(key)

    N, C, H, W = 2, 4, 16, 16
    image = jax.random.uniform(k_img, (N, C, H, W), jnp.float32)
    mask = (jax.random.uniform(k_mask, (N, 1, H, W)) > 0.5).astype(jnp.float32)

    # Random-size path (Resize.get_random_size with min_size/max_size), host RNG.
    rng = np.random.default_rng(0)
    min_size, max_size = 0.5, 1.5
    OH, OW = get_random_size(rng, H, W, min_size, max_size)

    # Default fast path: bf16 MXU operands, f32 accumulation.
    out_img, out_mask = resize_forward(image, mask, (OH, OW))
    jax.block_until_ready((out_img, out_mask))

    assert out_img.shape == (N, C, OH, OW)
    assert out_mask.shape == (N, 1, OH, OW)
    ref_img = ref_resize(image, OH, OW)
    ref_mask = ref_resize(mask, OH, OW)
    assert np.allclose(np.asarray(out_img), ref_img, atol=3e-2), "image mismatch vs reference (bf16)"
    assert np.allclose(np.asarray(out_mask), ref_mask, atol=3e-2), "mask mismatch vs reference (bf16)"

    # Explicit-scale path (forward(..., size=0.75)), f32 operands -> tight check.
    size = 0.75
    OH2, OW2 = int(size * H), int(size * W)
    out2, _ = resize_forward(image, None, (OH2, OW2), compute_dtype=jnp.float32)
    jax.block_until_ready(out2)
    assert out2.shape == (N, C, OH2, OW2)
    assert np.allclose(np.asarray(out2), ref_resize(image, OH2, OW2), atol=1e-3), \
        "image mismatch vs reference (f32)"

    print("KERNEL_OK")
</pallas_src>

<mosaic_0001>
module attributes {stable_mosaic.version = 11 : i64} {
  func.func @_resize_kernel(%arg0: i32, %arg1: i32, %arg2: memref<24x16xbf16, #tpu.memory_space<vmem>>, %arg3: memref<16x128xbf16, #tpu.memory_space<vmem>>, %arg4: memref<4x16x16xbf16, #tpu.memory_space<vmem>>, %arg5: memref<4x24x128xf32, #tpu.memory_space<vmem>>) attributes {dimension_semantics = [#tpu.dimension_semantics<parallel>, #tpu.dimension_semantics<parallel>], iteration_bounds = array<i64: 2, 1>, scalar_prefetch = 0 : i64, scratch_operands = 0 : i64, tpu.core_type = #tpu.core_type<tc>, window_params = [{pipeline_mode = #tpu.pipeline_mode<synchronous>, transform_indices = @transform_0, window_bounds = array<i64: 24, 16>}, {pipeline_mode = #tpu.pipeline_mode<synchronous>, transform_indices = @transform_1, window_bounds = array<i64: 16, 128>}, {transform_indices = @transform_2, window_bounds = array<i64: 4, 16, 16>}, {transform_indices = @transform_3, window_bounds = array<i64: 4, 24, 128>}]} {
    %c0 = arith.constant 0 : index
    %c0_0 = arith.constant 0 : index
    %0 = vector.load %arg2[%c0, %c0_0] : memref<24x16xbf16, #tpu.memory_space<vmem>>, vector<24x16xbf16>
    %c0_1 = arith.constant 0 : index
    %c0_2 = arith.constant 0 : index
    %1 = vector.load %arg3[%c0_1, %c0_2] : memref<16x128xbf16, #tpu.memory_space<vmem>>, vector<16x128xbf16>
    %c0_3 = arith.constant 0 : index
    %c0_4 = arith.constant 0 : index
    %c0_5 = arith.constant 0 : index
    %2 = vector.load %arg4[%c0_3, %c0_4, %c0_5] : memref<4x16x16xbf16, #tpu.memory_space<vmem>>, vector<1x16x16xbf16>
    %3 = vector.shape_cast %2 : vector<1x16x16xbf16> to vector<16x16xbf16>
    %cst = arith.constant dense<0.000000e+00> : vector<24x16xf32>
    %4 = tpu.matmul %0, %3, %cst {dimension_numbers = #tpu.dot_dimension_numbers<[1], [0], [0], [1], [0, 0, 1, 1], [], []>} : vector<24x16xbf16>, vector<16x16xbf16>, vector<24x16xf32> -> vector<24x16xf32>
    %5 = arith.truncf %4 : vector<24x16xf32> to vector<24x16xbf16>
    %cst_6 = arith.constant dense<0.000000e+00> : vector<24x128xf32>
    %6 = tpu.matmul %5, %1, %cst_6 {dimension_numbers = #tpu.dot_dimension_numbers<[1], [0], [0], [1], [0, 0, 1, 1], [], []>} : vector<24x16xbf16>, vector<16x128xbf16>, vector<24x128xf32> -> vector<24x128xf32>
    %c0_7 = arith.constant 0 : index
    %c0_8 = arith.constant 0 : index
    %c0_9 = arith.constant 0 : index
    %7 = vector.load %arg5[%c0_7, %c0_8, %c0_9] : memref<4x24x128xf32, #tpu.memory_space<vmem>>, vector<1x24x128xf32>
    %8 = vector.shape_cast %7 : vector<1x24x128xf32> to vector<24x128xf32>
    %9 = vector.shape_cast %6 : vector<24x128xf32> to vector<1x24x128xf32>
    tpu.vector_store %arg5[%c0_7, %c0_8, %c0_9], %9 {strides = array<i32>} : memref<4x24x128xf32, #tpu.memory_space<vmem>>, vector<1x24x128xf32>,
    %c1 = arith.constant 1 : index
    %c0_10 = arith.constant 0 : index
    %c0_11 = arith.constant 0 : index
    %10 = vector.load %arg4[%c1, %c0_10, %c0_11] : memref<4x16x16xbf16, #tpu.memory_space<vmem>>, vector<1x16x16xbf16>
    %11 = vector.shape_cast %10 : vector<1x16x16xbf16> to vector<16x16xbf16>
    %cst_12 = arith.constant dense<0.000000e+00> : vector<24x16xf32>
    %12 = tpu.matmul %0, %11, %cst_12 {dimension_numbers = #tpu.dot_dimension_numbers<[1], [0], [0], [1], [0, 0, 1, 1], [], []>} : vector<24x16xbf16>, vector<16x16xbf16>, vector<24x16xf32> -> vector<24x16xf32>
    %13 = arith.truncf %12 : vector<24x16xf32> to vector<24x16xbf16>
    %cst_13 = arith.constant dense<0.000000e+00> : vector<24x128xf32>
    %14 = tpu.matmul %13, %1, %cst_13 {dimension_numbers = #tpu.dot_dimension_numbers<[1], [0], [0], [1], [0, 0, 1, 1], [], []>} : vector<24x16xbf16>, vector<16x128xbf16>, vector<24x128xf32> -> vector<24x128xf32>
    %c1_14 = arith.constant 1 : index
    %c0_15 = arith.constant 0 : index
    %c0_16 = arith.constant 0 : index
    %15 = vector.load %arg5[%c1_14, %c0_15, %c0_16] : memref<4x24x128xf32, #tpu.memory_space<vmem>>, vector<1x24x128xf32>
    %16 = vector.shape_cast %15 : vector<1x24x128xf32> to vector<24x128xf32>
    %17 = vector.shape_cast %14 : vector<24x128xf32> to vector<1x24x128xf32>
    tpu.vector_store %arg5[%c1_14, %c0_15, %c0_16], %17 {strides = array<i32>} : memref<4x24x128xf32, #tpu.memory_space<vmem>>, vector<1x24x128xf32>,
    %c2 = arith.constant 2 : index
    %c0_17 = arith.constant 0 : index
    %c0_18 = arith.constant 0 : index
    %18 = vector.load %arg4[%c2, %c0_17, %c0_18] : memref<4x16x16xbf16, #tpu.memory_space<vmem>>, vector<1x16x16xbf16>
    %19 = vector.shape_cast %18 : vector<1x16x16xbf16> to vector<16x16xbf16>
    %cst_19 = arith.constant dense<0.000000e+00> : vector<24x16xf32>
    %20 = tpu.matmul %0, %19, %cst_19 {dimension_numbers = #tpu.dot_dimension_numbers<[1], [0], [0], [1], [0, 0, 1, 1], [], []>} : vector<24x16xbf16>, vector<16x16xbf16>, vector<24x16xf32> -> vector<24x16xf32>
    %21 = arith.truncf %20 : vector<24x16xf32> to vector<24x16xbf16>
    %cst_20 = arith.constant dense<0.000000e+00> : vector<24x128xf32>
    %22 = tpu.matmul %21, %1, %cst_20 {dimension_numbers = #tpu.dot_dimension_numbers<[1], [0], [0], [1], [0, 0, 1, 1], [], []>} : vector<24x16xbf16>, vector<16x128xbf16>, vector<24x128xf32> -> vector<24x128xf32>
    %c2_21 = arith.constant 2 : index
    %c0_22 = arith.constant 0 : index
    %c0_23 = arith.constant 0 : index
    %23 = vector.load %arg5[%c2_21, %c0_22, %c0_23] : memref<4x24x128xf32, #tpu.memory_space<vmem>>, vector<1x24x128xf32>
    %24 = vector.shape_cast %23 : vector<1x24x128xf32> to vector<24x128xf32>
    %25 = vector.shape_cast %22 : vector<24x128xf32> to vector<1x24x128xf32>
    tpu.vector_store %arg5[%c2_21, %c0_22, %c0_23], %25 {strides = array<i32>} : memref<4x24x128xf32, #tpu.memory_space<vmem>>, vector<1x24x128xf32>,
    %c3 = arith.constant 3 : index
    %c0_24 = arith.constant 0 : index
    %c0_25 = arith.constant 0 : index
    %26 = vector.load %arg4[%c3, %c0_24, %c0_25] : memref<4x16x16xbf16, #tpu.memory_space<vmem>>, vector<1x16x16xbf16>
    %27 = vector.shape_cast %26 : vector<1x16x16xbf16> to vector<16x16xbf16>
    %cst_26 = arith.constant dense<0.000000e+00> : vector<24x16xf32>
    %28 = tpu.matmul %0, %27, %cst_26 {dimension_numbers = #tpu.dot_dimension_numbers<[1], [0], [0], [1], [0, 0, 1, 1], [], []>} : vector<24x16xbf16>, vector<16x16xbf16>, vector<24x16xf32> -> vector<24x16xf32>
    %29 = arith.truncf %28 : vector<24x16xf32> to vector<24x16xbf16>
    %cst_27 = arith.constant dense<0.000000e+00> : vector<24x128xf32>
    %30 = tpu.matmul %29, %1, %cst_27 {dimension_numbers = #tpu.dot_dimension_numbers<[1], [0], [0], [1], [0, 0, 1, 1], [], []>} : vector<24x16xbf16>, vector<16x128xbf16>, vector<24x128xf32> -> vector<24x128xf32>
    %c3_28 = arith.constant 3 : index
    %c0_29 = arith.constant 0 : index
    %c0_30 = arith.constant 0 : index
    %31 = vector.load %arg5[%c3_28, %c0_29, %c0_30] : memref<4x24x128xf32, #tpu.memory_space<vmem>>, vector<1x24x128xf32>
    %32 = vector.shape_cast %31 : vector<1x24x128xf32> to vector<24x128xf32>
    %33 = vector.shape_cast %30 : vector<24x128xf32> to vector<1x24x128xf32>
    tpu.vector_store %arg5[%c3_28, %c0_29, %c0_30], %33 {strides = array<i32>} : memref<4x24x128xf32, #tpu.memory_space<vmem>>, vector<1x24x128xf32>,
    return
  }
  func.func @transform_0(%arg0: i32, %arg1: i32) -> (i32, i32) {
    %c0_i32 = arith.constant 0 : i32
    %c0_i32_0 = arith.constant 0 : i32
    return %arg1, %c0_i32 : i32, i32
  }
  func.func @transform_1(%arg0: i32, %arg1: i32) -> (i32, i32) {
    %c0_i32 = arith.constant 0 : i32
    %c0_i32_0 = arith.constant 0 : i32
    %c0_i32_1 = arith.constant 0 : i32
    return %c0_i32, %c0_i32_0 : i32, i32
  }
  func.func @transform_2(%arg0: i32, %arg1: i32) -> (i32, i32, i32) {
    %c0_i32 = arith.constant 0 : i32
    %c0_i32_0 = arith.constant 0 : i32
    %c0_i32_1 = arith.constant 0 : i32
    return %arg0, %c0_i32, %c0_i32_0 : i32, i32, i32
  }
  func.func @transform_3(%arg0: i32, %arg1: i32) -> (i32, i32, i32) {
    %c0_i32 = arith.constant 0 : i32
    %c0_i32_0 = arith.constant 0 : i32
    return %arg0, %arg1, %c0_i32 : i32, i32, i32
  }
}

module attributes {stable_mosaic.version = 11 : i64} {
  func.func @_resize_kernel(%arg0: i32, %arg1: i32, %arg2: memref<24x16xbf16, #tpu.memory_space<vmem>>, %arg3: memref<16x128xbf16, #tpu.memory_space<vmem>>, %arg4: memref<4x16x16xbf16, #tpu.memory_space<vmem>>, %arg5: memref<4x24x128xf32, #tpu.memory_space<vmem>>) attributes {dimension_semantics = [#tpu.dimension_semantics<parallel>, #tpu.dimension_semantics<parallel>], iteration_bounds = array<i64: 2, 1>, scalar_prefetch = 0 : i64, scratch_operands = 0 : i64, tpu.core_type = #tpu.core_type<tc>, window_params = [{transform_indices = @transform_0, window_bounds = array<i64: 24, 16>}, {pipeline_mode = #tpu.pipeline_mode<synchronous>, transform_indices = @transform_1, window_bounds = array<i64: 16, 128>}, {transform_indices = @transform_2, window_bounds = array<i64: 4, 16, 16>}, {transform_indices = @transform_3, window_bounds = array<i64: 4, 24, 128>}]} {
    %c0 = arith.constant 0 : index
    %c0_0 = arith.constant 0 : index
    %0 = vector.load %arg2[%c0, %c0_0] : memref<24x16xbf16, #tpu.memory_space<vmem>>, vector<24x16xbf16>
    %c0_1 = arith.constant 0 : index
    %c0_2 = arith.constant 0 : index
    %1 = vector.load %arg3[%c0_1, %c0_2] : memref<16x128xbf16, #tpu.memory_space<vmem>>, vector<16x128xbf16>
    %c0_3 = arith.constant 0 : index
    %c0_4 = arith.constant 0 : index
    %c0_5 = arith.constant 0 : index
    %2 = vector.load %arg4[%c0_3, %c0_4, %c0_5] : memref<4x16x16xbf16, #tpu.memory_space<vmem>>, vector<1x16x16xbf16>
    %3 = vector.shape_cast %2 : vector<1x16x16xbf16> to vector<16x16xbf16>
    %cst = arith.constant dense<0.000000e+00> : vector<24x16xf32>
    %4 = tpu.matmul %0, %3, %cst {dimension_numbers = #tpu.dot_dimension_numbers<[1], [0], [0], [1], [0, 0, 1, 1], [], []>} : vector<24x16xbf16>, vector<16x16xbf16>, vector<24x16xf32> -> vector<24x16xf32>
    %5 = arith.truncf %4 : vector<24x16xf32> to vector<24x16xbf16>
    %cst_6 = arith.constant dense<0.000000e+00> : vector<24x128xf32>
    %6 = tpu.matmul %5, %1, %cst_6 {dimension_numbers = #tpu.dot_dimension_numbers<[1], [0], [0], [1], [0, 0, 1, 1], [], []>} : vector<24x16xbf16>, vector<16x128xbf16>, vector<24x128xf32> -> vector<24x128xf32>
    %c0_7 = arith.constant 0 : index
    %c0_8 = arith.constant 0 : index
    %c0_9 = arith.constant 0 : index
    %7 = vector.load %arg5[%c0_7, %c0_8, %c0_9] : memref<4x24x128xf32, #tpu.memory_space<vmem>>, vector<1x24x128xf32>
    %8 = vector.shape_cast %7 : vector<1x24x128xf32> to vector<24x128xf32>
    %9 = vector.shape_cast %6 : vector<24x128xf32> to vector<1x24x128xf32>
    tpu.vector_store %arg5[%c0_7, %c0_8, %c0_9], %9 {strides = array<i32>} : memref<4x24x128xf32, #tpu.memory_space<vmem>>, vector<1x24x128xf32>,
    %c1 = arith.constant 1 : index
    %c0_10 = arith.constant 0 : index
    %c0_11 = arith.constant 0 : index
    %10 = vector.load %arg4[%c1, %c0_10, %c0_11] : memref<4x16x16xbf16, #tpu.memory_space<vmem>>, vector<1x16x16xbf16>
    %11 = vector.shape_cast %10 : vector<1x16x16xbf16> to vector<16x16xbf16>
    %cst_12 = arith.constant dense<0.000000e+00> : vector<24x16xf32>
    %12 = tpu.matmul %0, %11, %cst_12 {dimension_numbers = #tpu.dot_dimension_numbers<[1], [0], [0], [1], [0, 0, 1, 1], [], []>} : vector<24x16xbf16>, vector<16x16xbf16>, vector<24x16xf32> -> vector<24x16xf32>
    %13 = arith.truncf %12 : vector<24x16xf32> to vector<24x16xbf16>
    %cst_13 = arith.constant dense<0.000000e+00> : vector<24x128xf32>
    %14 = tpu.matmul %13, %1, %cst_13 {dimension_numbers = #tpu.dot_dimension_numbers<[1], [0], [0], [1], [0, 0, 1, 1], [], []>} : vector<24x16xbf16>, vector<16x128xbf16>, vector<24x128xf32> -> vector<24x128xf32>
    %c1_14 = arith.constant 1 : index
    %c0_15 = arith.constant 0 : index
    %c0_16 = arith.constant 0 : index
    %15 = vector.load %arg5[%c1_14, %c0_15, %c0_16] : memref<4x24x128xf32, #tpu.memory_space<vmem>>, vector<1x24x128xf32>
    %16 = vector.shape_cast %15 : vector<1x24x128xf32> to vector<24x128xf32>
    %17 = vector.shape_cast %14 : vector<24x128xf32> to vector<1x24x128xf32>
    tpu.vector_store %arg5[%c1_14, %c0_15, %c0_16], %17 {strides = array<i32>} : memref<4x24x128xf32, #tpu.memory_space<vmem>>, vector<1x24x128xf32>,
    %c2 = arith.constant 2 : index
    %c0_17 = arith.constant 0 : index
    %c0_18 = arith.constant 0 : index
    %18 = vector.load %arg4[%c2, %c0_17, %c0_18] : memref<4x16x16xbf16, #tpu.memory_space<vmem>>, vector<1x16x16xbf16>
    %19 = vector.shape_cast %18 : vector<1x16x16xbf16> to vector<16x16xbf16>
    %cst_19 = arith.constant dense<0.000000e+00> : vector<24x16xf32>
    %20 = tpu.matmul %0, %19, %cst_19 {dimension_numbers = #tpu.dot_dimension_numbers<[1], [0], [0], [1], [0, 0, 1, 1], [], []>} : vector<24x16xbf16>, vector<16x16xbf16>, vector<24x16xf32> -> vector<24x16xf32>
    %21 = arith.truncf %20 : vector<24x16xf32> to vector<24x16xbf16>
    %cst_20 = arith.constant dense<0.000000e+00> : vector<24x128xf32>
    %22 = tpu.matmul %21, %1, %cst_20 {dimension_numbers = #tpu.dot_dimension_numbers<[1], [0], [0], [1], [0, 0, 1, 1], [], []>} : vector<24x16xbf16>, vector<16x128xbf16>, vector<24x128xf32> -> vector<24x128xf32>
    %c2_21 = arith.constant 2 : index
    %c0_22 = arith.constant 0 : index
    %c0_23 = arith.constant 0 : index
    %23 = vector.load %arg5[%c2_21, %c0_22, %c0_23] : memref<4x24x128xf32, #tpu.memory_space<vmem>>, vector<1x24x128xf32>
    %24 = vector.shape_cast %23 : vector<1x24x128xf32> to vector<24x128xf32>
    %25 = vector.shape_cast %22 : vector<24x128xf32> to vector<1x24x128xf32>
    tpu.vector_store %arg5[%c2_21, %c0_22, %c0_23], %25 {strides = array<i32>} : memref<4x24x128xf32, #tpu.memory_space<vmem>>, vector<1x24x128xf32>,
    %c3 = arith.constant 3 : index
    %c0_24 = arith.constant 0 : index
    %c0_25 = arith.constant 0 : index
    %26 = vector.load %arg4[%c3, %c0_24, %c0_25] : memref<4x16x16xbf16, #tpu.memory_space<vmem>>, vector<1x16x16xbf16>
    %27 = vector.shape_cast %26 : vector<1x16x16xbf16> to vector<16x16xbf16>
    %cst_26 = arith.constant dense<0.000000e+00> : vector<24x16xf32>
    %28 = tpu.matmul %0, %27, %cst_26 {dimension_numbers = #tpu.dot_dimension_numbers<[1], [0], [0], [1], [0, 0, 1, 1], [], []>} : vector<24x16xbf16>, vector<16x16xbf16>, vector<24x16xf32> -> vector<24x16xf32>
    %29 = arith.truncf %28 : vector<24x16xf32> to vector<24x16xbf16>
    %cst_27 = arith.constant dense<0.000000e+00> : vector<24x128xf32>
    %30 = tpu.matmul %29, %1, %cst_27 {dimension_numbers = #tpu.dot_dimension_numbers<[1], [0], [0], [1], [0, 0, 1, 1], [], []>} : vector<24x16xbf16>, vector<16x128xbf16>, vector<24x128xf32> -> vector<24x128xf32>
    %c3_28 = arith.constant 3 : index
    %c0_29 = arith.constant 0 : index
    %c0_30 = arith.constant 0 : index
    %31 = vector.load %arg5[%c3_28, %c0_29, %c0_30] : memref<4x24x128xf32, #tpu.memory_space<vmem>>, vector<1x24x128xf32>
    %32 = vector.shape_cast %31 : vector<1x24x128xf32> to vector<24x128xf32>
    %33 = vector.shape_cast %30 : vector<24x128xf32> to vector<1x24x128xf32>
    tpu.vector_store %arg5[%c3_28, %c0_29, %c0_30], %33 {strides = array<i32>} : memref<4x24x128xf32, #tpu.memory_space<vmem>>, vector<1x24x128xf32>,
    return
  }
  func.func @transform_0(%arg0: i32, %arg1: i32) -> (i32, i32) {
    %c0_i32 = arith.constant 0 : i32
    %c0_i32_0 = arith.constant 0 : i32
    return %arg1, %c0_i32 : i32, i32
  }
  func.func @transform_1(%arg0: i32, %arg1: i32) -> (i32, i32) {
    %c0_i32 = arith.constant 0 : i32
    %c0_i32_0 = arith.constant 0 : i32
    %c0_i32_1 = arith.constant 0 : i32
    return %c0_i32, %c0_i32_0 : i32, i32
  }
  func.func @transform_2(%arg0: i32, %arg1: i32) -> (i32, i32, i32) {
    %c0_i32 = arith.constant 0 : i32
    %c0_i32_0 = arith.constant 0 : i32
    %c0_i32_1 = arith.constant 0 : i32
    return %arg0, %c0_i32, %c0_i32_0 : i32, i32, i32
  }
  func.func @transform_3(%arg0: i32, %arg1: i32) -> (i32, i32, i32) {
    %c0_i32 = arith.constant 0 : i32
    %c0_i32_0 = arith.constant 0 : i32
    return %arg0, %arg1, %c0_i32 : i32, i32, i32
  }
}

</mosaic_0001>

<bundles_post_ra>
// kernel: tpu_custom_call.1
= control target key start
LH: loop header
LB: loop body
LE: loop exit
PB: predicated region body
PF: predicated region fallthrough
CT: control target
= control target key end

     0   :  { %8 = vsyncpa [#allocation3], 0  ;;  %s1397_s0 = inlined_call_operand.vmem [shape: bf16[24,16], index: 0, kind: input, shape index: {}]   ;;  %s1398_s1 = inlined_call_operand.vmem [shape: bf16[16,128], index: 1, kind: input, shape index: {}]   ;;  %s1399_s2 = inlined_call_operand.hbm [shape: bf16[8,16,16], index: 2, kind: input, shape index: {}]   ;;  %s1400_s3 = inlined_call_operand.hbm [shape: f32[8,24,128], index: 3, kind: output, shape index: {}]  }
   0x1   :  { %10 = vsyncpa [#allocation3 + $0x1], 0 }
   0x2   :  { %11 = vsyncpa [#allocation4], 0 }
   0x3   :  { %13 = vsyncpa [#allocation4 + $0x1], 0  ;;  %s1181_s12 = smov 0   ;;  %s1183_s13 = smov 0  }
   0x4   :  { %s1185_s14 = smov 0   ;;  %s1187_s15 = smov 0  }
   0x5   :  { %s1189_s16 = smov 0   ;;  %s1191_s17 = smov 0  }
   0x6 LB: > { %s838_s18 = sadd.s32 4294967295, %s1153_s17   ;;  %s839_s19 = sadd.s32 4294967294, %s1153_s17   ;;  %s1153_s17 = sphi %s1191_s17, %s19_s17   ;;  %s1149_s16 = sphi %s1189_s16, %s1415_s16   ;;  %s1145_s15 = sphi %s1187_s15, %s1414_s15   ;;  %s1141_s14 = sphi %s1185_s14, %s1413_s14   ;;  %s1137_s13 = sphi %s1183_s13, %s1412_s13   ;;  %s1133_s12 = sphi %s1181_s12, %s1411_s12  }
   0x7   : > { %s31_s20 = sadd.s32 1, %s1149_s16  ;;  %s85_s21 = sadd.s32 1, %s1141_s14 }
   0x8   : > { %p33_p0 = scmp.ge.s32.totalorder %s31_s20, 2  ;;  %p92_p1 = scmp.ne.s32.totalorder %s1141_s14, %s1137_s13 }
   0x9   : > { %p93_p2 = scmp.eq.s32.totalorder %s1153_s17, 0  ;;  %p98_p3 = scmp.ne.s32.totalorder %s1137_s13, %s1133_s12 }
   0xa   : > { %s1417_s20 = smov (%p33_p0, %s31_s20), 0  ;;  %p99_p5 = scmp.eq.s32.totalorder %s838_s18, 0 }
   0xb   : > { %p1222_p4 = por %p93_p2, %p92_p1  ;;  %s82_s23 = ssub.s32 %s1149_s16, %s1417_s20 }
   0xc   : > { %p124_p6 = scmp.eq.s32.totalorder %s838_s18, 1  ;;  %p83_p7 = scmp.eq.s32.totalorder %s82_s23, 0 }
   0xd   : > { %p1228_p8 = por %p99_p5, %p98_p3  ;;  %p130_p10 = scmp.eq.s32.totalorder %s839_s19, 1 }
   0xe   : > { %p1232_p9 = por %p124_p6, %p92_p1  ;;  %p980_p13 = scmp.lt.s32.totalorder %s1153_s17, 2 }
   0xf   : > { %s1237_s26 = scalar_select %p83_p7, %s1141_s14, %s85_s21  }
  0x10   : > { %s1404_s25 = scalar_select %p1232_p9, 1, 0 }
  0x11   : > { %p1239_p11 = por %p130_p10, %p98_p3  ;;  %s162_s28 = sand.u32 1, %s1141_s14  }
  0x12   : > { %s843_s29 = sshll.u32 %s162_s28, 5  ;;  %s893_s30 = sshll.u32 %s1149_s16, 9 }
  0x13   : > { %s1405_s27 = scalar_select %p1239_p11, 1, 0 }
  0x14   : > { %s1250_s6 = scalar_lea.hbm %s1399_s2, %s893_s30  ;;  %s166_s7 = scalar_lea.vmem [#allocation2], %s843_s29 }
  0x15   : > { %s174_s8 = sshll.u32 %s166_s7, 4  ;;  %p1256_p0 = pnand %p980_p13, %p1222_p4  ;;  %s1252_s8 = int_to_ptr.vmem [resolvable:$true] %s174_s8 }
  0x16   : > { %s1261_s10 = scalar_lea.sflag [#allocation3], %s162_s28  ;;  %s1041_s11 = scalar_lea.hbm %s1250_s6, 512 }
  0x17   : > { %p1042_p2 = scmp.ne.s32.totalorder %s1250_s6, %s1041_s11  ;;  %p1043_p3 = pneg %p1256_p0 }
  0x18   : > { %s1046_s21 = scalar_lea.hbm %s1399_s2, 1024  ;;  %p1047_p4 = scmp.lt.u32.totalorder %s1250_s6, %s1399_s2 }
  0x19   : > { %p1044_p5 = pnand %p1043_p3, %p1042_p2  ;;  %p1048_p7 = scmp.lt.u32.totalorder %s1046_s21, %s1041_s11 }
  0x1a   : > { %p1050_p13 = scmp.lt.u32.totalorder %s1041_s11, %s1250_s6 }
  0x1b   : > { %p1045_p6 = pneg %p1044_p5  ;;  %p1049_p10 = por %p1048_p7, %p1047_p4 }
  0x1d   : > { %p1051_p12 = por %p1050_p13, %p1049_p10 }
  0x1f   : > { %p1052_p1 = pnand %p1051_p12, %p1045_p6 }
  0x21   : > { %1055 = shalt.err (!%p1052_p1)
}
  0x22   : > { %s1056_s28 = scalar_lea.vmem %s1252_s8, 512  ;;  %s1155_s29 = smov [#allocation2]  }
  0x23   : > { %p1057_p2 = scmp.ne.s32.totalorder %s1252_s8, %s1056_s28  ;;  %s1061_s30 = sshll.u32 %s1155_s29, 4  ;;  %s1062_s30 = int_to_ptr.vmem [resolvable:$false] %s1061_s30 }
  0x24   : > { %s1063_s4 = scalar_lea.vmem %s1062_s30, 1024  ;;  %p1064_p9 = scmp.lt.s32.totalorder %s1252_s8, %s1062_s30 }
  0x25   : > { %p1059_p5 = pnand %p1057_p2, %p1043_p3  ;;  %p1065_p4 = scmp.lt.s32.totalorder %s1063_s4, %s1056_s28 }
  0x27   : > { %p1060_p11 = pneg %p1059_p5  ;;  %p1066_p7 = por %p1065_p4, %p1064_p9 }
  0x29   : > { %p1067_p10 = pnand %p1066_p7, %p1060_p11 }
  0x2b   : > { %1070 = shalt.err (!%p1067_p10)
}
  0x2c   : > { %s1156_s5 = smov 64   ;;  %s1157_s7 = smov 4  }
  0x2d   : > { %975 = dma.hbm_to_vmem [thread:$0]  (!%p1256_p0), %s1250_s6, 512, %s1252_s8, %s1261_s10, %s1156_s5, %s1156_s5, %s1157_s7  }
  0x2e   : > { %p182_p12 = scmp.lt.s32.totalorder %s1153_s17, 3  ;;  %p1407_p1 = scmp.ge.s32.totalorder %s1153_s17, 1 }
  0x30   : > { %p183_p3 = pnand %p1407_p1, %p182_p12 }
  0x31   : > { %s1293_s11 = sand.u32 (!%p183_p3), 1, %s1137_s13  }
  0x32   : > { %186 = sbr.rel (%p183_p3) target bundleno = 535 (0x217), region = 32  ;;  %s848_s18 = sshll.u32 (!%p183_p3), %s1293_s11, 5 }
  0x33   : > { %s189_s19 = scalar_lea.sflag (!%p183_p3), [#allocation3], %s1293_s11  ;;  %s192_s21 = scalar_lea.vmem (!%p183_p3), [#allocation2], %s848_s18 }
  0x39   : > { %1124 = dma.done.wait (%p1228_p8), %s189_s19, 512  }
  0x3a   : > { %1126 = vsyncadd (%p1228_p8), %s189_s19, 4294966784  ;;  %v1034_v0 = vld [vmem:[%s192_s21] sm:$0xff]   ;;  %vm251_vm0 = vcmask 130048   ;;  %v1035_v1 = vld [vmem:[%s1397_s0] sm:$0xff]   ;;  %s966_s23 = smul.u32 96, %s1293_s11  ;;  %s723_s18 = scalar_lea.sflag [#allocation4], %s1293_s11 }
  0x3b   : > { %918 = vmatprep.subr.bf16.mxu0 %v1034_v0  ;;  %v1036_v2 = vld [vmem:[%s1397_s0 + $0x8] ss:$0 sps:$4 sm:$0xff]   ;;  %920 = vmatprep.mubr.msk.bf16.mxu0 %vm251_vm0, %v1035_v1  ;;  %v1037_v3 = vld [vmem:[%s192_s21 + $0x8] sm:$0xff]   ;;  %v1039_v5 = vld [vmem:[%s192_s21 + $0x18] sm:$0xff]   ;;  %s967_s29 = smul.u32 1536, %s1145_s15  ;;  %p1408_p9 = scmp.ne.s32.totalorder %s1404_s25, 0 }
  0x3c   : > { %919 = vmatpush3.bf16.msra.mxu0 %v1034_v0  ;;  %v1038_v4 = vld [vmem:[%s192_s21 + $0x10] sm:$0xff]   ;;  %v1040_v6 = vld [vmem:[%s1398_s1] sm:$0xff]   ;;  %s1327_s28 = scalar_lea.vmem [#allocation5], %s966_s23  ;;  %s1158_s19 = smov [#allocation5]  }
  0x3d   : > { %930 = vmatprep.subr.bf16.mxu0 %v1037_v3  ;;  %924 = vmatprep.subr.bf16.mxu1 %v1040_v6  ;;  %s739_s30 = sshll.u32 %s1327_s28, 4  ;;  %s1344_s7 = scalar_lea.hbm %s1400_s3, %s967_s29  ;;  %s1346_s30 = int_to_ptr.vmem [resolvable:$true] %s739_s30 }
  0x3e   : > { %925 = vmatpush3.bf16.msra.mxu1 %v1040_v6  ;;  %s1071_s15 = scalar_lea.vmem %s1346_s30, 1536  ;;  %s1075_s21 = sshll.u32 %s1158_s19, 4  ;;  %s1076_s21 = int_to_ptr.vmem [resolvable:$false] %s1075_s21 }
  0x3f   : > { %921 = vmatmul.mubr.msk.bf16.vlgmr.msra.gmra.mrb[0].mxu0 %vm251_vm0, %v1036_v2  ;;  %936 = vmatprep.subr.bf16.mxu1 %v1040_v6  ;;  %p1072_p8 = scmp.ne.s32.totalorder %s1346_s30, %s1071_s15  ;;  %s1077_s6 = scalar_lea.vmem %s1076_s21, 3072 }
  0x40   : > { %931 = vmatpush3.bf16.msra.mxu0 %v1037_v3  ;;  %932 = vmatprep.mubr.msk.bf16.mxu0 %vm251_vm0, %v1035_v1  ;;  %p1078_p6 = scmp.lt.s32.totalorder %s1346_s30, %s1076_s21  ;;  %p1079_p13 = scmp.lt.s32.totalorder %s1077_s6, %s1071_s15 }
  0x41   : > { %942 = vmatprep.subr.bf16.mxu0 %v1038_v4  ;;  %p1073_p11 = pnand %p1072_p8, %p1408_p9 }
  0x42   : > { %p1080_p2 = por %p1079_p13, %p1078_p6 }
  0x43   : > { %p1074_p0 = pneg %p1073_p11 }
  0x45   : > { %p1081_p5 = pnand %p1080_p2, %p1074_p0 }
  0x47   : > { %933 = vmatmul.mubr.msk.bf16.vlgmr.msra.gmra.mrb[4].mxu0 %vm251_vm0, %v1036_v2 }
  0x48   : > { %943 = vmatpush3.bf16.msra.mxu0 %v1038_v4  ;;  %944 = vmatprep.mubr.msk.bf16.mxu0 %vm251_vm0, %v1035_v1 }
  0x49   : > { %954 = vmatprep.subr.bf16.mxu0 %v1039_v5 }
  0x4f   : > { %945 = vmatmul.mubr.msk.bf16.vlgmr.msra.gmra.mrb[8].mxu0 %vm251_vm0, %v1036_v2 }
  0x50   : > { %955 = vmatpush3.bf16.msra.mxu0 %v1039_v5  ;;  %956 = vmatprep.mubr.msk.bf16.mxu0 %vm251_vm0, %v1035_v1 }
  0x57   : > { %957 = vmatmul.mubr.msk.bf16.vlgmr.msra.gmra.mrb[12].mxu0 %vm251_vm0, %v1036_v2 }
 0x112   : > { %v922_v7 = vpop.f32.mrb[0].mxu0 }
 0x113   : > { %v292_v8 = vpop.f32.mrb[1].mxu0  ;;  %v307_v12 = vpack.c.bf16 %v922_v7, %v922_v7 }
 0x114   : > { %v923_v9 = vpop.f32.mrb[2].mxu0 }
 0x115   : > { %v295_v10 = vpop.f32.mrb[3].mxu0 }
 0x116   : > { %v306_v11 = vpack.c.bf16 %v295_v10, %v292_v8 }
 0x118   : > { %926 = vmatprep.mubr.msk.bf16.mxu1 %vm251_vm0, %v306_v11 }
 0x119   : > { %927 = vmatmul.mubr.msk.bf16.vlgmr.msra.gmra.mrb[0].mxu1 %vm251_vm0, %v307_v12 }
 0x11a   : > { %v934_v13 = vpop.f32.mrb[4].mxu0  ;;  %937 = vmatpush3.bf16.msra.mxu1 %v1040_v6 }
 0x11b   : > { %v414_v14 = vpop.f32.mrb[5].mxu0  ;;  %948 = vmatprep.subr.bf16.mxu1 %v1040_v6  ;;  %v429_v18 = vpack.c.bf16 %v934_v13, %v934_v13 }
 0x11c   : > { %v935_v15 = vpop.f32.mrb[6].mxu0 }
 0x11d   : > { %v417_v16 = vpop.f32.mrb[7].mxu0 }
 0x11e   : > { %v428_v17 = vpack.c.bf16 %v417_v16, %v414_v14 }
 0x120   : > { %938 = vmatprep.mubr.msk.bf16.mxu1 %vm251_vm0, %v428_v17 }
 0x121   : > { %939 = vmatmul.mubr.msk.bf16.vlgmr.msra.gmra.mrb[4].mxu1 %vm251_vm0, %v429_v18 }
 0x122   : > { %v946_v19 = vpop.f32.mrb[8].mxu0  ;;  %949 = vmatpush3.bf16.msra.mxu1 %v1040_v6 }
 0x123   : > { %v531_v20 = vpop.f32.mrb[9].mxu0  ;;  %960 = vmatprep.subr.bf16.mxu1 %v1040_v6  ;;  %v546_v24 = vpack.c.bf16 %v946_v19, %v946_v19 }
 0x124   : > { %v947_v21 = vpop.f32.mrb[10].mxu0 }
 0x125   : > { %v534_v22 = vpop.f32.mrb[11].mxu0 }
 0x126   : > { %v545_v23 = vpack.c.bf16 %v534_v22, %v531_v20 }
 0x128   : > { %950 = vmatprep.mubr.msk.bf16.mxu1 %vm251_vm0, %v545_v23 }
 0x129   : > { %951 = vmatmul.mubr.msk.bf16.vlgmr.msra.gmra.mrb[8].mxu1 %vm251_vm0, %v546_v24 }
 0x12a   : > { %v958_v25 = vpop.f32.mrb[12].mxu0  ;;  %961 = vmatpush3.bf16.msra.mxu1 %v1040_v6 }
 0x12b   : > { %v648_v26 = vpop.f32.mrb[13].mxu0  ;;  %v663_v30 = vpack.c.bf16 %v958_v25, %v958_v25 }
 0x12c   : > { %v959_v27 = vpop.f32.mrb[14].mxu0 }
 0x12d   : > { %v651_v28 = vpop.f32.mrb[15].mxu0 }
 0x12e   : > { %v662_v29 = vpack.c.bf16 %v651_v28, %v648_v26 }
 0x130   : > { %962 = vmatprep.mubr.msk.bf16.mxu1 %vm251_vm0, %v662_v29 }
 0x131   : > { %963 = vmatmul.mubr.msk.bf16.vlgmr.msra.gmra.mrb[12].mxu1 %vm251_vm0, %v663_v30 }
 0x1ec   : > { %v928_v31 = vpop.f32.mrb[0].mxu1 }
 0x1ed   : > { %370 = vst [vmem:[%s1327_s28 + $0x10] sm:$0xff] %v928_v31  ;;  %v354_v32 = vpop.f32.mrb[1].mxu1 }
 0x1ee   : > { %368 = vst [vmem:[%s1327_s28] sm:$0xff] %v354_v32  ;;  %v929_v33 = vpop.f32.mrb[2].mxu1 }
 0x1ef   : > { %v357_v34 = vpop.f32.mrb[3].mxu1 }
 0x1f0   : > { %369 = vst [vmem:[%s1327_s28 + $0x8] sm:$0xff] %v357_v34 }
 0x1f4   : > { %v940_v35 = vpop.f32.mrb[4].mxu1 }
 0x1f5   : > { %866 = vst [vmem:[%s1327_s28 + $0x28] sm:$0xff] %v940_v35  ;;  %v470_v36 = vpop.f32.mrb[5].mxu1 }
 0x1f6   : > { %864 = vst [vmem:[%s1327_s28 + $0x18] sm:$0xff] %v470_v36  ;;  %v941_v37 = vpop.f32.mrb[6].mxu1 }
 0x1f7   : > { %v473_v38 = vpop.f32.mrb[7].mxu1 }
 0x1f8   : > { %865 = vst [vmem:[%s1327_s28 + $0x20] sm:$0xff] %v473_v38 }
 0x1fc   : > { %v952_v39 = vpop.f32.mrb[8].mxu1 }
 0x1fd   : > { %876 = vst [vmem:[%s1327_s28 + $0x40] sm:$0xff] %v952_v39  ;;  %v587_v40 = vpop.f32.mrb[9].mxu1 }
 0x1fe   : > { %874 = vst [vmem:[%s1327_s28 + $0x30] sm:$0xff] %v587_v40  ;;  %v953_v41 = vpop.f32.mrb[10].mxu1 }
 0x1ff   : > { %v590_v42 = vpop.f32.mrb[11].mxu1 }
 0x200   : > { %875 = vst [vmem:[%s1327_s28 + $0x38] sm:$0xff] %v590_v42 }
 0x204   : > { %v964_v43 = vpop.f32.mrb[12].mxu1 }
 0x205   : > { %886 = vst [vmem:[%s1327_s28 + $0x58] sm:$0xff] %v964_v43  ;;  %v704_v44 = vpop.f32.mrb[13].mxu1 }
 0x206   : > { %884 = vst [vmem:[%s1327_s28 + $0x48] sm:$0xff] %v704_v44  ;;  %v965_v45 = vpop.f32.mrb[14].mxu1 }
 0x207   : > { %v707_v46 = vpop.f32.mrb[15].mxu1 }
 0x208   : > { %885 = vst [vmem:[%s1327_s28 + $0x50] sm:$0xff] %v707_v46 }
 0x209   : > { %1084 = shalt.err (!%p1081_p5)
}
 0x20a   : > { %s1085_s8 = scalar_lea.hbm %s1344_s7, 1536  ;;  %s1089_s24 = scalar_lea.hbm %s1400_s3, 3072 }
 0x20b   : > { %p1086_p4 = scmp.ne.s32.totalorder %s1344_s7, %s1085_s8  ;;  %p1090_p12 = scmp.lt.u32.totalorder %s1344_s7, %s1400_s3 }
 0x20c   : > { %p1091_p1 = scmp.lt.u32.totalorder %s1089_s24, %s1085_s8  ;;  %p1093_p8 = scmp.lt.u32.totalorder %s1085_s8, %s1344_s7 }
 0x20d   : > { %p1087_p7 = pnand %p1086_p4, %p1408_p9 }
 0x20e   : > { %p1092_p3 = por %p1091_p1, %p1090_p12 }
 0x20f   : > { %p1088_p10 = pneg %p1087_p7 }
 0x210   : > { %p1094_p11 = por %p1093_p8, %p1092_p3 }
 0x212   : > { %p1095_p0 = pnand %p1094_p11, %p1088_p10 }
 0x214   : > { %1098 = shalt.err (!%p1095_p0)
}
 0x215   : > { %s1159_s28 = smov 128   ;;  %s1160_s29 = smov 8  }
 0x216   : > { %970 = dma.vmem_to_hbm [thread:$0]  (%p1408_p9), %s1346_s30, 1536, %s1344_s7, %s723_s18, %s1159_s28, %s1159_s28, %s1160_s29  }
 0x217 PF: > { %s754_s4 = sand.u32 1, %s1133_s12   ;;  %p1409_p6 = scmp.ne.s32.totalorder %s1405_s27, 0 }
 0x218   : > { %p1410_p13 = scmp.ge.s32.totalorder %s1153_s17, 2  ;;  %s755_s5 = scalar_lea.sflag [#allocation4], %s754_s4 }
 0x21a   : > { %p977_p2 = pnand %p1410_p13, %p1409_p6 }
 0x21c   : > { %1128 = dma.done.wait (!%p977_p2), %s755_s5, 1536  }
 0x21d   : > { %1130 = vsyncadd (!%p977_p2), %s755_s5, 4294965760  ;;  %s19_s17 = sadd.s32 1, %s1153_s17   ;;  %s1411_s12 = smov %s1137_s13 }
 0x21e   : > { %p16_p5 = scmp.ge.s32.totalorder %s19_s17, 4   ;;  %s1412_s13 = smov %s1141_s14 }
 0x21f   : > { %s1413_s14 = smov %s1237_s26  ;;  %s1414_s15 = smov %s1149_s16 }
 0x220   : > { %s1415_s16 = smov %s1417_s20  ;;  %18 = sbr.rel (!%p16_p5) target bundleno = 6 (0x6), region = 86 }
 0x227   :  { %760 = vsyncpa [#allocation3], 1 }
 0x228   :  { %762 = vsyncpa [#allocation3 + $0x1], 1 }
 0x229   :  { %763 = vsyncpa [#allocation4], 1 }
 0x22a   :  { %765 = vsyncpa [#allocation4 + $0x1], 1 }

// kernel: tpu_custom_call.1
= control target key start
LH: loop header
LB: loop body
LE: loop exit
PB: predicated region body
PF: predicated region fallthrough
CT: control target
= control target key end

     0   :  { %8 = vsyncpa [#allocation3], 0  ;;  %s1397_s0 = inlined_call_operand.vmem [shape: bf16[24,16], index: 0, kind: input, shape index: {}]   ;;  %s1398_s1 = inlined_call_operand.vmem [shape: bf16[16,128], index: 1, kind: input, shape index: {}]   ;;  %s1399_s2 = inlined_call_operand.hbm [shape: bf16[8,16,16], index: 2, kind: input, shape index: {}]   ;;  %s1400_s3 = inlined_call_operand.hbm [shape: f32[8,24,128], index: 3, kind: output, shape index: {}]  }
   0x1   :  { %10 = vsyncpa [#allocation3 + $0x1], 0 }
   0x2   :  { %11 = vsyncpa [#allocation4], 0 }
   0x3   :  { %13 = vsyncpa [#allocation4 + $0x1], 0  ;;  %s1181_s12 = smov 0   ;;  %s1183_s13 = smov 0  }
   0x4   :  { %s1185_s14 = smov 0   ;;  %s1187_s15 = smov 0  }
   0x5   :  { %s1189_s16 = smov 0   ;;  %s1191_s17 = smov 0  }
   0x6 LB: > { %s838_s18 = sadd.s32 4294967295, %s1153_s17   ;;  %s839_s19 = sadd.s32 4294967294, %s1153_s17   ;;  %s1153_s17 = sphi %s1191_s17, %s19_s17   ;;  %s1149_s16 = sphi %s1189_s16, %s1415_s16   ;;  %s1145_s15 = sphi %s1187_s15, %s1414_s15   ;;  %s1141_s14 = sphi %s1185_s14, %s1413_s14   ;;  %s1137_s13 = sphi %s1183_s13, %s1412_s13   ;;  %s1133_s12 = sphi %s1181_s12, %s1411_s12  }
   0x7   : > { %s31_s20 = sadd.s32 1, %s1149_s16  ;;  %s85_s21 = sadd.s32 1, %s1141_s14 }
   0x8   : > { %p33_p0 = scmp.ge.s32.totalorder %s31_s20, 2  ;;  %p92_p1 = scmp.ne.s32.totalorder %s1141_s14, %s1137_s13 }
   0x9   : > { %p93_p2 = scmp.eq.s32.totalorder %s1153_s17, 0  ;;  %p98_p3 = scmp.ne.s32.totalorder %s1137_s13, %s1133_s12 }
   0xa   : > { %s1417_s20 = smov (%p33_p0, %s31_s20), 0  ;;  %p99_p5 = scmp.eq.s32.totalorder %s838_s18, 0 }
   0xb   : > { %p1222_p4 = por %p93_p2, %p92_p1  ;;  %s82_s23 = ssub.s32 %s1149_s16, %s1417_s20 }
   0xc   : > { %p124_p6 = scmp.eq.s32.totalorder %s838_s18, 1  ;;  %p83_p7 = scmp.eq.s32.totalorder %s82_s23, 0 }
   0xd   : > { %p1228_p8 = por %p99_p5, %p98_p3  ;;  %p130_p10 = scmp.eq.s32.totalorder %s839_s19, 1 }
   0xe   : > { %p1232_p9 = por %p124_p6, %p92_p1  ;;  %p980_p13 = scmp.lt.s32.totalorder %s1153_s17, 2 }
   0xf   : > { %s1237_s26 = scalar_select %p83_p7, %s1141_s14, %s85_s21  }
  0x10   : > { %s1404_s25 = scalar_select %p1232_p9, 1, 0 }
  0x11   : > { %p1239_p11 = por %p130_p10, %p98_p3  ;;  %s162_s28 = sand.u32 1, %s1141_s14  }
  0x12   : > { %s843_s29 = sshll.u32 %s162_s28, 5  ;;  %s893_s30 = sshll.u32 %s1149_s16, 9 }
  0x13   : > { %s1405_s27 = scalar_select %p1239_p11, 1, 0 }
  0x14   : > { %s1250_s6 = scalar_lea.hbm %s1399_s2, %s893_s30  ;;  %s166_s7 = scalar_lea.vmem [#allocation2], %s843_s29 }
  0x15   : > { %s174_s8 = sshll.u32 %s166_s7, 4  ;;  %p1256_p0 = pnand %p980_p13, %p1222_p4  ;;  %s1252_s8 = int_to_ptr.vmem [resolvable:$true] %s174_s8 }
  0x16   : > { %s1261_s10 = scalar_lea.sflag [#allocation3], %s162_s28  ;;  %s1041_s11 = scalar_lea.hbm %s1250_s6, 512 }
  0x17   : > { %p1042_p2 = scmp.ne.s32.totalorder %s1250_s6, %s1041_s11  ;;  %p1043_p3 = pneg %p1256_p0 }
  0x18   : > { %s1046_s21 = scalar_lea.hbm %s1399_s2, 1024  ;;  %p1047_p4 = scmp.lt.u32.totalorder %s1250_s6, %s1399_s2 }
  0x19   : > { %p1044_p5 = pnand %p1043_p3, %p1042_p2  ;;  %p1048_p7 = scmp.lt.u32.totalorder %s1046_s21, %s1041_s11 }
  0x1a   : > { %p1050_p13 = scmp.lt.u32.totalorder %s1041_s11, %s1250_s6 }
  0x1b   : > { %p1045_p6 = pneg %p1044_p5  ;;  %p1049_p10 = por %p1048_p7, %p1047_p4 }
  0x1d   : > { %p1051_p12 = por %p1050_p13, %p1049_p10 }
  0x1f   : > { %p1052_p1 = pnand %p1051_p12, %p1045_p6 }
  0x21   : > { %1055 = shalt.err (!%p1052_p1)
}
  0x22   : > { %s1056_s28 = scalar_lea.vmem %s1252_s8, 512  ;;  %s1155_s29 = smov [#allocation2]  }
  0x23   : > { %p1057_p2 = scmp.ne.s32.totalorder %s1252_s8, %s1056_s28  ;;  %s1061_s30 = sshll.u32 %s1155_s29, 4  ;;  %s1062_s30 = int_to_ptr.vmem [resolvable:$false] %s1061_s30 }
  0x24   : > { %s1063_s4 = scalar_lea.vmem %s1062_s30, 1024  ;;  %p1064_p9 = scmp.lt.s32.totalorder %s1252_s8, %s1062_s30 }
  0x25   : > { %p1059_p5 = pnand %p1057_p2, %p1043_p3  ;;  %p1065_p4 = scmp.lt.s32.totalorder %s1063_s4, %s1056_s28 }
  0x27   : > { %p1060_p11 = pneg %p1059_p5  ;;  %p1066_p7 = por %p1065_p4, %p1064_p9 }
  0x29   : > { %p1067_p10 = pnand %p1066_p7, %p1060_p11 }
  0x2b   : > { %1070 = shalt.err (!%p1067_p10)
}
  0x2c   : > { %s1156_s5 = smov 64   ;;  %s1157_s7 = smov 4  }
  0x2d   : > { %975 = dma.hbm_to_vmem [thread:$0]  (!%p1256_p0), %s1250_s6, 512, %s1252_s8, %s1261_s10, %s1156_s5, %s1156_s5, %s1157_s7  }
  0x2e   : > { %p182_p12 = scmp.lt.s32.totalorder %s1153_s17, 3  ;;  %p1407_p1 = scmp.ge.s32.totalorder %s1153_s17, 1 }
  0x30   : > { %p183_p3 = pnand %p1407_p1, %p182_p12 }
  0x31   : > { %s1293_s11 = sand.u32 (!%p183_p3), 1, %s1137_s13  }
  0x32   : > { %186 = sbr.rel (%p183_p3) target bundleno = 535 (0x217), region = 32  ;;  %s848_s18 = sshll.u32 (!%p183_p3), %s1293_s11, 5 }
  0x33   : > { %s189_s19 = scalar_lea.sflag (!%p183_p3), [#allocation3], %s1293_s11  ;;  %s192_s21 = scalar_lea.vmem (!%p183_p3), [#allocation2], %s848_s18 }
  0x39   : > { %1124 = dma.done.wait (%p1228_p8), %s189_s19, 512  }
  0x3a   : > { %1126 = vsyncadd (%p1228_p8), %s189_s19, 4294966784  ;;  %v1034_v0 = vld [vmem:[%s192_s21] sm:$0xff]   ;;  %vm251_vm0 = vcmask 130048   ;;  %v1035_v1 = vld [vmem:[%s1397_s0] sm:$0xff]   ;;  %s966_s23 = smul.u32 96, %s1293_s11  ;;  %s723_s18 = scalar_lea.sflag [#allocation4], %s1293_s11 }
  0x3b   : > { %918 = vmatprep.subr.bf16.mxu0 %v1034_v0  ;;  %v1036_v2 = vld [vmem:[%s1397_s0 + $0x8] ss:$0 sps:$4 sm:$0xff]   ;;  %920 = vmatprep.mubr.msk.bf16.mxu0 %vm251_vm0, %v1035_v1  ;;  %v1037_v3 = vld [vmem:[%s192_s21 + $0x8] sm:$0xff]   ;;  %v1039_v5 = vld [vmem:[%s192_s21 + $0x18] sm:$0xff]   ;;  %s967_s29 = smul.u32 1536, %s1145_s15  ;;  %p1408_p9 = scmp.ne.s32.totalorder %s1404_s25, 0 }
  0x3c   : > { %919 = vmatpush3.bf16.msra.mxu0 %v1034_v0  ;;  %v1038_v4 = vld [vmem:[%s192_s21 + $0x10] sm:$0xff]   ;;  %v1040_v6 = vld [vmem:[%s1398_s1] sm:$0xff]   ;;  %s1327_s28 = scalar_lea.vmem [#allocation5], %s966_s23  ;;  %s1158_s19 = smov [#allocation5]  }
  0x3d   : > { %930 = vmatprep.subr.bf16.mxu0 %v1037_v3  ;;  %924 = vmatprep.subr.bf16.mxu1 %v1040_v6  ;;  %s739_s30 = sshll.u32 %s1327_s28, 4  ;;  %s1344_s7 = scalar_lea.hbm %s1400_s3, %s967_s29  ;;  %s1346_s30 = int_to_ptr.vmem [resolvable:$true] %s739_s30 }
  0x3e   : > { %925 = vmatpush3.bf16.msra.mxu1 %v1040_v6  ;;  %s1071_s15 = scalar_lea.vmem %s1346_s30, 1536  ;;  %s1075_s21 = sshll.u32 %s1158_s19, 4  ;;  %s1076_s21 = int_to_ptr.vmem [resolvable:$false] %s1075_s21 }
  0x3f   : > { %921 = vmatmul.mubr.msk.bf16.vlgmr.msra.gmra.mrb[0].mxu0 %vm251_vm0, %v1036_v2  ;;  %936 = vmatprep.subr.bf16.mxu1 %v1040_v6  ;;  %p1072_p8 = scmp.ne.s32.totalorder %s1346_s30, %s1071_s15  ;;  %s1077_s6 = scalar_lea.vmem %s1076_s21, 3072 }
  0x40   : > { %931 = vmatpush3.bf16.msra.mxu0 %v1037_v3  ;;  %932 = vmatprep.mubr.msk.bf16.mxu0 %vm251_vm0, %v1035_v1  ;;  %p1078_p6 = scmp.lt.s32.totalorder %s1346_s30, %s1076_s21  ;;  %p1079_p13 = scmp.lt.s32.totalorder %s1077_s6, %s1071_s15 }
  0x41   : > { %942 = vmatprep.subr.bf16.mxu0 %v1038_v4  ;;  %p1073_p11 = pnand %p1072_p8, %p1408_p9 }
  0x42   : > { %p1080_p2 = por %p1079_p13, %p1078_p6 }
  0x43   : > { %p1074_p0 = pneg %p1073_p11 }
  0x45   : > { %p1081_p5 = pnand %p1080_p2, %p1074_p0 }
  0x47   : > { %933 = vmatmul.mubr.msk.bf16.vlgmr.msra.gmra.mrb[4].mxu0 %vm251_vm0, %v1036_v2 }
  0x48   : > { %943 = vmatpush3.bf16.msra.mxu0 %v1038_v4  ;;  %944 = vmatprep.mubr.msk.bf16.mxu0 %vm251_vm0, %v1035_v1 }
  0x49   : > { %954 = vmatprep.subr.bf16.mxu0 %v1039_v5 }
  0x4f   : > { %945 = vmatmul.mubr.msk.bf16.vlgmr.msra.gmra.mrb[8].mxu0 %vm251_vm0, %v1036_v2 }
  0x50   : > { %955 = vmatpush3.bf16.msra.mxu0 %v1039_v5  ;;  %956 = vmatprep.mubr.msk.bf16.mxu0 %vm251_vm0, %v1035_v1 }
  0x57   : > { %957 = vmatmul.mubr.msk.bf16.vlgmr.msra.gmra.mrb[12].mxu0 %vm251_vm0, %v1036_v2 }
 0x112   : > { %v922_v7 = vpop.f32.mrb[0].mxu0 }
 0x113   : > { %v292_v8 = vpop.f32.mrb[1].mxu0  ;;  %v307_v12 = vpack.c.bf16 %v922_v7, %v922_v7 }
 0x114   : > { %v923_v9 = vpop.f32.mrb[2].mxu0 }
 0x115   : > { %v295_v10 = vpop.f32.mrb[3].mxu0 }
 0x116   : > { %v306_v11 = vpack.c.bf16 %v295_v10, %v292_v8 }
 0x118   : > { %926 = vmatprep.mubr.msk.bf16.mxu1 %vm251_vm0, %v306_v11 }
 0x119   : > { %927 = vmatmul.mubr.msk.bf16.vlgmr.msra.gmra.mrb[0].mxu1 %vm251_vm0, %v307_v12 }
 0x11a   : > { %v934_v13 = vpop.f32.mrb[4].mxu0  ;;  %937 = vmatpush3.bf16.msra.mxu1 %v1040_v6 }
 0x11b   : > { %v414_v14 = vpop.f32.mrb[5].mxu0  ;;  %948 = vmatprep.subr.bf16.mxu1 %v1040_v6  ;;  %v429_v18 = vpack.c.bf16 %v934_v13, %v934_v13 }
 0x11c   : > { %v935_v15 = vpop.f32.mrb[6].mxu0 }
 0x11d   : > { %v417_v16 = vpop.f32.mrb[7].mxu0 }
 0x11e   : > { %v428_v17 = vpack.c.bf16 %v417_v16, %v414_v14 }
 0x120   : > { %938 = vmatprep.mubr.msk.bf16.mxu1 %vm251_vm0, %v428_v17 }
 0x121   : > { %939 = vmatmul.mubr.msk.bf16.vlgmr.msra.gmra.mrb[4].mxu1 %vm251_vm0, %v429_v18 }
 0x122   : > { %v946_v19 = vpop.f32.mrb[8].mxu0  ;;  %949 = vmatpush3.bf16.msra.mxu1 %v1040_v6 }
 0x123   : > { %v531_v20 = vpop.f32.mrb[9].mxu0  ;;  %960 = vmatprep.subr.bf16.mxu1 %v1040_v6  ;;  %v546_v24 = vpack.c.bf16 %v946_v19, %v946_v19 }
 0x124   : > { %v947_v21 = vpop.f32.mrb[10].mxu0 }
 0x125   : > { %v534_v22 = vpop.f32.mrb[11].mxu0 }
 0x126   : > { %v545_v23 = vpack.c.bf16 %v534_v22, %v531_v20 }
 0x128   : > { %950 = vmatprep.mubr.msk.bf16.mxu1 %vm251_vm0, %v545_v23 }
 0x129   : > { %951 = vmatmul.mubr.msk.bf16.vlgmr.msra.gmra.mrb[8].mxu1 %vm251_vm0, %v546_v24 }
 0x12a   : > { %v958_v25 = vpop.f32.mrb[12].mxu0  ;;  %961 = vmatpush3.bf16.msra.mxu1 %v1040_v6 }
 0x12b   : > { %v648_v26 = vpop.f32.mrb[13].mxu0  ;;  %v663_v30 = vpack.c.bf16 %v958_v25, %v958_v25 }
 0x12c   : > { %v959_v27 = vpop.f32.mrb[14].mxu0 }
 0x12d   : > { %v651_v28 = vpop.f32.mrb[15].mxu0 }
 0x12e   : > { %v662_v29 = vpack.c.bf16 %v651_v28, %v648_v26 }
 0x130   : > { %962 = vmatprep.mubr.msk.bf16.mxu1 %vm251_vm0, %v662_v29 }
 0x131   : > { %963 = vmatmul.mubr.msk.bf16.vlgmr.msra.gmra.mrb[12].mxu1 %vm251_vm0, %v663_v30 }
 0x1ec   : > { %v928_v31 = vpop.f32.mrb[0].mxu1 }
 0x1ed   : > { %370 = vst [vmem:[%s1327_s28 + $0x10] sm:$0xff] %v928_v31  ;;  %v354_v32 = vpop.f32.mrb[1].mxu1 }
 0x1ee   : > { %368 = vst [vmem:[%s1327_s28] sm:$0xff] %v354_v32  ;;  %v929_v33 = vpop.f32.mrb[2].mxu1 }
 0x1ef   : > { %v357_v34 = vpop.f32.mrb[3].mxu1 }
 0x1f0   : > { %369 = vst [vmem:[%s1327_s28 + $0x8] sm:$0xff] %v357_v34 }
 0x1f4   : > { %v940_v35 = vpop.f32.mrb[4].mxu1 }
 0x1f5   : > { %866 = vst [vmem:[%s1327_s28 + $0x28] sm:$0xff] %v940_v35  ;;  %v470_v36 = vpop.f32.mrb[5].mxu1 }
 0x1f6   : > { %864 = vst [vmem:[%s1327_s28 + $0x18] sm:$0xff] %v470_v36  ;;  %v941_v37 = vpop.f32.mrb[6].mxu1 }
 0x1f7   : > { %v473_v38 = vpop.f32.mrb[7].mxu1 }
 0x1f8   : > { %865 = vst [vmem:[%s1327_s28 + $0x20] sm:$0xff] %v473_v38 }
 0x1fc   : > { %v952_v39 = vpop.f32.mrb[8].mxu1 }
 0x1fd   : > { %876 = vst [vmem:[%s1327_s28 + $0x40] sm:$0xff] %v952_v39  ;;  %v587_v40 = vpop.f32.mrb[9].mxu1 }
 0x1fe   : > { %874 = vst [vmem:[%s1327_s28 + $0x30] sm:$0xff] %v587_v40  ;;  %v953_v41 = vpop.f32.mrb[10].mxu1 }
 0x1ff   : > { %v590_v42 = vpop.f32.mrb[11].mxu1 }
 0x200   : > { %875 = vst [vmem:[%s1327_s28 + $0x38] sm:$0xff] %v590_v42 }
 0x204   : > { %v964_v43 = vpop.f32.mrb[12].mxu1 }
 0x205   : > { %886 = vst [vmem:[%s1327_s28 + $0x58] sm:$0xff] %v964_v43  ;;  %v704_v44 = vpop.f32.mrb[13].mxu1 }
 0x206   : > { %884 = vst [vmem:[%s1327_s28 + $0x48] sm:$0xff] %v704_v44  ;;  %v965_v45 = vpop.f32.mrb[14].mxu1 }
 0x207   : > { %v707_v46 = vpop.f32.mrb[15].mxu1 }
 0x208   : > { %885 = vst [vmem:[%s1327_s28 + $0x50] sm:$0xff] %v707_v46 }
 0x209   : > { %1084 = shalt.err (!%p1081_p5)
}
 0x20a   : > { %s1085_s8 = scalar_lea.hbm %s1344_s7, 1536  ;;  %s1089_s24 = scalar_lea.hbm %s1400_s3, 3072 }
 0x20b   : > { %p1086_p4 = scmp.ne.s32.totalorder %s1344_s7, %s1085_s8  ;;  %p1090_p12 = scmp.lt.u32.totalorder %s1344_s7, %s1400_s3 }
 0x20c   : > { %p1091_p1 = scmp.lt.u32.totalorder %s1089_s24, %s1085_s8  ;;  %p1093_p8 = scmp.lt.u32.totalorder %s1085_s8, %s1344_s7 }
 0x20d   : > { %p1087_p7 = pnand %p1086_p4, %p1408_p9 }
 0x20e   : > { %p1092_p3 = por %p1091_p1, %p1090_p12 }
 0x20f   : > { %p1088_p10 = pneg %p1087_p7 }
 0x210   : > { %p1094_p11 = por %p1093_p8, %p1092_p3 }
 0x212   : > { %p1095_p0 = pnand %p1094_p11, %p1088_p10 }
 0x214   : > { %1098 = shalt.err (!%p1095_p0)
}
 0x215   : > { %s1159_s28 = smov 128   ;;  %s1160_s29 = smov 8  }
 0x216   : > { %970 = dma.vmem_to_hbm [thread:$0]  (%p1408_p9), %s1346_s30, 1536, %s1344_s7, %s723_s18, %s1159_s28, %s1159_s28, %s1160_s29  }
 0x217 PF: > { %s754_s4 = sand.u32 1, %s1133_s12   ;;  %p1409_p6 = scmp.ne.s32.totalorder %s1405_s27, 0 }
 0x218   : > { %p1410_p13 = scmp.ge.s32.totalorder %s1153_s17, 2  ;;  %s755_s5 = scalar_lea.sflag [#allocation4], %s754_s4 }
 0x21a   : > { %p977_p2 = pnand %p1410_p13, %p1409_p6 }
 0x21c   : > { %1128 = dma.done.wait (!%p977_p2), %s755_s5, 1536  }
 0x21d   : > { %1130 = vsyncadd (!%p977_p2), %s755_s5, 4294965760  ;;  %s19_s17 = sadd.s32 1, %s1153_s17   ;;  %s1411_s12 = smov %s1137_s13 }
 0x21e   : > { %p16_p5 = scmp.ge.s32.totalorder %s19_s17, 4   ;;  %s1412_s13 = smov %s1141_s14 }
 0x21f   : > { %s1413_s14 = smov %s1237_s26  ;;  %s1414_s15 = smov %s1149_s16 }
 0x220   : > { %s1415_s16 = smov %s1417_s20  ;;  %18 = sbr.rel (!%p16_p5) target bundleno = 6 (0x6), region = 86 }
 0x227   :  { %760 = vsyncpa [#allocation3], 1 }
 0x228   :  { %762 = vsyncpa [#allocation3 + $0x1], 1 }
 0x229   :  { %763 = vsyncpa [#allocation4], 1 }
 0x22a   :  { %765 = vsyncpa [#allocation4 + $0x1], 1 }

</bundles_post_ra>
